<compile_context>
chip_gen: v7x
topology: tpu7x:2x2x1
jax: 0.10.0
libtpu: 0.0.40
codegen_flags: <defaults>
</compile_context>

<pallas_src>
import functools

import jax
import jax.numpy as jnp
from jax.experimental import pallas as pl
from jax.experimental.pallas import tpu as pltpu


def cnn_lstm_kernel(x_ref, w_ref, out_ref, *,
                    H, Hg, Dp, Tc, Bp, Cp,
                    o_w0, o_w1, o_bx, o_whh, o_wfc, o_bfc):
    """Fused (conv-folded) LSTM + Linear forward.

    x_ref  : (T*Bp, Cp)  time-major x, batch padded to Bp, channels zero-padded to Cp
    w_ref  : (R, L)      packed weight slab; static sublane-aligned row offsets:
                           [o_w0 : +Cp, :Hg]  conv-tap-0 @ W_ih        (g-cols pre-scaled by 2)
                           [o_w1 : +Cp, :Hg]  conv-tap-1 @ W_ih        (g-cols pre-scaled by 2)
                           [o_bx : +1 , :Hg]  folded gate bias         (g-cols pre-scaled by 2)
                           [o_whh: +H , :Hg]  W_hh^T                   (g-cols pre-scaled by 2)
                           [o_wfc: +H , :Dp]  W_fc^T (lane-padded)
                           [o_bfc: +1 , :Dp]  b_fc   (lane-padded)
    out_ref: (Bp, Dp)
    """
    x = x_ref[...]                                                  # (T*Bp, Cp)
    w0 = w_ref[o_w0:o_w0 + Cp, :Hg]
    w1 = w_ref[o_w1:o_w1 + Cp, :Hg]
    bx = w_ref[o_bx:o_bx + 1, :Hg]
    whh = w_ref[o_whh:o_whh + H, :Hg]

    # All timestep input-gate contributions in two batched MXU matmuls (off the serial
    # path).  Taps are combined with a sublane-shifted slice add; bias added exactly once.
    ga = jnp.dot(x, w0, preferred_element_type=jnp.float32)        # (T*Bp, 4H)
    gb = jnp.dot(x, w1, preferred_element_type=jnp.float32)        # (T*Bp, 4H)
    gx = ga[:Tc * Bp, :] + gb[Bp:, :] + bx                          # (Tc*Bp, 4H), lane-dense

    h = jnp.zeros((Bp, H), jnp.float32)
    c = jnp.zeros((Bp, H), jnp.float32)

    # Fully unrolled recurrence (Tc is a small static trip count); slice offsets are
    # static multiples of Bp=8 sublanes.  Only h@whh + elementwise remains per step.
    for t in range(Tc):
        gates = gx[t * Bp:(t + 1) * Bp, :] + jnp.dot(
            h, whh, preferred_element_type=jnp.float32)             # (Bp, 4H)
        # Single full-width EUP sigmoid; g-gate tanh folded as 2*sigmoid(2z)-1 (exact).
        sg = jax.nn.sigmoid(gates)
        i_g = sg[:, 0 * H:1 * H]
        f_g = sg[:, 1 * H:2 * H]
        g_g = 2.0 * sg[:, 2 * H:3 * H] - 1.0
        o_g = sg[:, 3 * H:4 * H]
        c = f_g * c + i_g * g_g
        h = o_g * jnp.tanh(c)

    wfc = w_ref[o_wfc:o_wfc + H, :Dp]
    bfc = w_ref[o_bfc:o_bfc + 1, :Dp]
    # Final Linear on h_n.squeeze(0); Dp is a lane multiple -> unmasked stores.
    out_ref[...] = jnp.dot(h, wfc, preferred_element_type=jnp.float32) + bfc


def cnn_lstm_forward(x, params):
    """x: (B, T, C) float32 (batch_first layout the PyTorch module receives)."""
    B, T, C = x.shape
    H = params["whh"].shape[0]
    D = params["wfc"].shape[1]
    Tc = T - 1
    Hg = 4 * H
    Bp = ((B + 7) // 8) * 8            # sublane-aligned batch
    Cp = ((C + 7) // 8) * 8            # sublane-aligned channel (K dim of tap matmuls)
    Hp = ((H + 7) // 8) * 8
    Dp = ((D + 127) // 128) * 128      # lane-dense output slab
    L = max(((Hg + 127) // 128) * 128, Dp)   # common lane width of the packed slab

    # --- trace-time algebraic folding of Conv1d into the LSTM input projection (exact) ---
    w0p = params["w0"] @ params["wih"]                       # (C, 4H)
    w1p = params["w1"] @ params["wih"]                       # (C, 4H)
    bx = params["bc"] @ params["wih"] + params["bg"]         # (1, 4H)
    whh = params["whh"]                                      # (H, 4H)

    # --- tanh fold: scale the g-gate (cols 2H:3H) pre-activation by 2 so that
    #     tanh(z) == 2*sigmoid(2z) - 1 can be computed from the single sigmoid push ---
    gsc = jnp.ones((1, Hg), jnp.float32).at[:, 2 * H:3 * H].set(2.0)
    w0p = w0p * gsc
    w1p = w1p * gsc
    bx = bx * gsc
    whh = whh * gsc

    # --- pack all weight/bias operands into one lane-dense slab (one DMA instead of five) ---
    def seg(a, rows, cols=L):
        r, c = a.shape
        return jnp.pad(a, ((0, rows - r), (0, cols - c)))

    o_w0 = 0
    o_w1 = o_w0 + Cp
    o_bx = o_w1 + Cp
    o_whh = o_bx + 8
    o_wfc = o_whh + Hp
    o_bfc = o_wfc + Hp
    packed = jnp.concatenate([
        seg(w0p, Cp),
        seg(w1p, Cp),
        seg(bx, 8),
        seg(whh, Hp),
        seg(params["wfc"], Hp),
        seg(params["bfc"], 8),
    ], axis=0)                                               # (R, L) f32

    # --- layout plumbing: pad batch/channels, go time-major (no tap concatenation) ---
    x_p = jnp.pad(x, ((0, Bp - B), (0, 0), (0, Cp - C)))     # (Bp, T, Cp)
    x_tm = jnp.transpose(x_p, (1, 0, 2)).reshape(T * Bp, Cp)  # (T*Bp, Cp)

    kernel = functools.partial(
        cnn_lstm_kernel,
        H=H, Hg=Hg, Dp=Dp, Tc=Tc, Bp=Bp, Cp=Cp,
        o_w0=o_w0, o_w1=o_w1, o_bx=o_bx, o_whh=o_whh, o_wfc=o_wfc, o_bfc=o_bfc)

    out_p = pl.pallas_call(
        kernel,
        out_shape=jax.ShapeDtypeStruct((Bp, Dp), jnp.float32),
        in_specs=[pl.BlockSpec(memory_space=pltpu.MemorySpace.VMEM),
                  pl.BlockSpec(memory_space=pltpu.MemorySpace.VMEM)],
        out_specs=pl.BlockSpec(memory_space=pltpu.MemorySpace.VMEM),
    )(x_tm, packed)
    return out_p[:B, :D]


def cnn_lstm_reference(x, params):
    """Pure-JAX reference mirroring the PyTorch forward pass exactly (no folding)."""
    B, T, _ = x.shape
    H = params["whh"].shape[0]
    Tc = T - 1
    conv = (jnp.einsum("btc,cf->btf", x[:, :-1, :], params["w0"])
            + jnp.einsum("btc,cf->btf", x[:, 1:, :], params["w1"])
            + params["bc"][None, :, :])  # (B, T-1, F)
    h = jnp.zeros((B, H), jnp.float32)
    c = jnp.zeros((B, H), jnp.float32)
    for t in range(Tc):
        gates = conv[:, t, :] @ params["wih"] + h @ params["whh"] + params["bg"]
        i_g = jax.nn.sigmoid(gates[:, 0 * H:1 * H])
        f_g = jax.nn.sigmoid(gates[:, 1 * H:2 * H])
        g_g = jnp.tanh(gates[:, 2 * H:3 * H])
        o_g = jax.nn.sigmoid(gates[:, 3 * H:4 * H])
        c = f_g * c + i_g * g_g
        h = o_g * jnp.tanh(c)
    return h @ params["wfc"] + params["bfc"]


if __name__ == "__main__":
    # Small, forward-consistent shapes.
    B, T, C = 2, 8, 4          # batch, seq_len, input_dim
    F, H, D = 16, 32, 8        # cnn_filters, lstm_hidden, output_days

    key = jax.random.PRNGKey(0)
    keys = jax.random.split(key, 10)
    scale = 0.1
    params = {
        # Conv1d(in=C, out=F, k=2): taps stored pre-transposed as (C, F)
        "w0": scale * jax.random.normal(keys[0], (C, F), jnp.float32),
        "w1": scale * jax.random.normal(keys[1], (C, F), jnp.float32),
        "bc": scale * jax.random.normal(keys[2], (1, F), jnp.float32),
        # LSTM (single layer), gate order i, f, g, o; weights pre-transposed
        "wih": scale * jax.random.normal(keys[3], (F, 4 * H), jnp.float32),
        "whh": scale * jax.random.normal(keys[4], (H, 4 * H), jnp.float32),
        "bg": scale * jax.random.normal(keys[5], (1, 4 * H), jnp.float32),  # b_ih + b_hh
        # Linear(H, D), pre-transposed
        "wfc": scale * jax.random.normal(keys[6], (H, D), jnp.float32),
        "bfc": scale * jax.random.normal(keys[7], (1, D), jnp.float32),
    }

    x = jax.random.normal(keys[8], (B, T, C), jnp.float32)

    out = cnn_lstm_forward(x, params)
    out = jax.block_until_ready(out)

    ref = cnn_lstm_reference(x, params)
    assert out.shape == (B, D), out.shape
    assert jnp.allclose(out, ref, atol=1e-4, rtol=1e-4), (
        f"mismatch: max abs err = {jnp.max(jnp.abs(out - ref))}")

    print("KERNEL_OK")
</pallas_src>

<mosaic_0001>
module attributes {stable_mosaic.version = 11 : i64} {
  func.func @cnn_lstm_kernel(%arg0: memref<64x8xf32, #tpu.memory_space<vmem>>, %arg1: memref<96x128xf32, #tpu.memory_space<vmem>>, %arg2: memref<8x128xf32, #tpu.memory_space<vmem>>) attributes {dimension_semantics = [], scalar_prefetch = 0 : i64, scratch_operands = 0 : i64, tpu.core_type = #tpu.core_type<tc>} {
    %c0 = arith.constant 0 : index
    %c0_0 = arith.constant 0 : index
    %0 = vector.load %arg0[%c0, %c0_0] : memref<64x8xf32, #tpu.memory_space<vmem>>, vector<64x8xf32>
    %c0_1 = arith.constant 0 : index
    %c0_2 = arith.constant 0 : index
    %1 = vector.load %arg1[%c0_1, %c0_2] : memref<96x128xf32, #tpu.memory_space<vmem>>, vector<8x128xf32>
    %c8 = arith.constant 8 : index
    %c0_3 = arith.constant 0 : index
    %2 = vector.load %arg1[%c8, %c0_3] : memref<96x128xf32, #tpu.memory_space<vmem>>, vector<8x128xf32>
    %c16 = arith.constant 16 : index
    %c0_4 = arith.constant 0 : index
    %3 = vector.load %arg1[%c16, %c0_4] : memref<96x128xf32, #tpu.memory_space<vmem>>, vector<1x128xf32>
    %c24 = arith.constant 24 : index
    %c0_5 = arith.constant 0 : index
    %4 = vector.load %arg1[%c24, %c0_5] : memref<96x128xf32, #tpu.memory_space<vmem>>, vector<32x128xf32>
    %cst = arith.constant dense<0.000000e+00> : vector<64x128xf32>
    %5 = tpu.matmul %0, %1, %cst {dimension_numbers = #tpu.dot_dimension_numbers<[1], [0], [0], [1], [0, 0, 1, 1], [], []>} : vector<64x8xf32>, vector<8x128xf32>, vector<64x128xf32> -> vector<64x128xf32>
    %cst_6 = arith.constant dense<0.000000e+00> : vector<64x128xf32>
    %6 = tpu.matmul %0, %2, %cst_6 {dimension_numbers = #tpu.dot_dimension_numbers<[1], [0], [0], [1], [0, 0, 1, 1], [], []>} : vector<64x8xf32>, vector<8x128xf32>, vector<64x128xf32> -> vector<64x128xf32>
    %7 = vector.extract_strided_slice %5 {offsets = [0, 0], sizes = [56, 128], strides = [1, 1]} : vector<64x128xf32> to vector<56x128xf32>
    %8 = vector.extract_strided_slice %6 {offsets = [8, 0], sizes = [56, 128], strides = [1, 1]} : vector<64x128xf32> to vector<56x128xf32>
    %9 = arith.addf %7, %8 : vector<56x128xf32>
    %10 = vector.broadcast %3 : vector<1x128xf32> to vector<56x128xf32>
    %11 = arith.addf %9, %10 : vector<56x128xf32>
    %cst_7 = arith.constant 0.000000e+00 : f32
    %12 = vector.broadcast %cst_7 : f32 to vector<8x32xf32>
    %cst_8 = arith.constant 0.000000e+00 : f32
    %13 = vector.broadcast %cst_8 : f32 to vector<8x32xf32>
    %14 = vector.extract_strided_slice %11 {offsets = [0, 0], sizes = [8, 128], strides = [1, 1]} : vector<56x128xf32> to vector<8x128xf32>
    %cst_9 = arith.constant dense<0.000000e+00> : vector<8x128xf32>
    %15 = tpu.matmul %12, %4, %cst_9 {dimension_numbers = #tpu.dot_dimension_numbers<[1], [0], [0], [1], [0, 0, 1, 1], [], []>} : vector<8x32xf32>, vector<32x128xf32>, vector<8x128xf32> -> vector<8x128xf32>
    %16 = arith.addf %14, %15 : vector<8x128xf32>
    %17 = arith.negf %16 : vector<8x128xf32>
    %18 = math.exp %17 : vector<8x128xf32>
    %cst_10 = arith.constant 1.000000e+00 : f32
    %19 = vector.broadcast %cst_10 : f32 to vector<8x128xf32>
    %20 = arith.addf %19, %18 : vector<8x128xf32>
    %21 = arith.divf %19, %20 : vector<8x128xf32>
    %22 = vector.extract_strided_slice %21 {offsets = [0, 0], sizes = [8, 32], strides = [1, 1]} : vector<8x128xf32> to vector<8x32xf32>
    %23 = vector.extract_strided_slice %21 {offsets = [0, 32], sizes = [8, 32], strides = [1, 1]} : vector<8x128xf32> to vector<8x32xf32>
    %24 = vector.extract_strided_slice %21 {offsets = [0, 64], sizes = [8, 32], strides = [1, 1]} : vector<8x128xf32> to vector<8x32xf32>
    %cst_11 = arith.constant 2.000000e+00 : f32
    %25 = vector.broadcast %cst_11 : f32 to vector<8x32xf32>
    %26 = arith.mulf %25, %24 : vector<8x32xf32>
    %cst_12 = arith.constant 1.000000e+00 : f32
    %27 = vector.broadcast %cst_12 : f32 to vector<8x32xf32>
    %28 = arith.subf %26, %27 : vector<8x32xf32>
    %29 = vector.extract_strided_slice %21 {offsets = [0, 96], sizes = [8, 32], strides = [1, 1]} : vector<8x128xf32> to vector<8x32xf32>
    %30 = arith.mulf %23, %13 : vector<8x32xf32>
    %31 = arith.mulf %22, %28 : vector<8x32xf32>
    %32 = arith.addf %30, %31 : vector<8x32xf32>
    %33 = math.tanh %32 : vector<8x32xf32>
    %34 = arith.mulf %29, %33 : vector<8x32xf32>
    %35 = vector.extract_strided_slice %11 {offsets = [8, 0], sizes = [8, 128], strides = [1, 1]} : vector<56x128xf32> to vector<8x128xf32>
    %cst_13 = arith.constant dense<0.000000e+00> : vector<8x128xf32>
    %36 = tpu.matmul %34, %4, %cst_13 {dimension_numbers = #tpu.dot_dimension_numbers<[1], [0], [0], [1], [0, 0, 1, 1], [], []>} : vector<8x32xf32>, vector<32x128xf32>, vector<8x128xf32> -> vector<8x128xf32>
    %37 = arith.addf %35, %36 : vector<8x128xf32>
    %38 = arith.negf %37 : vector<8x128xf32>
    %39 = math.exp %38 : vector<8x128xf32>
    %cst_14 = arith.constant 1.000000e+00 : f32
    %40 = vector.broadcast %cst_14 : f32 to vector<8x128xf32>
    %41 = arith.addf %40, %39 : vector<8x128xf32>
    %42 = arith.divf %40, %41 : vector<8x128xf32>
    %43 = vector.extract_strided_slice %42 {offsets = [0, 0], sizes = [8, 32], strides = [1, 1]} : vector<8x128xf32> to vector<8x32xf32>
    %44 = vector.extract_strided_slice %42 {offsets = [0, 32], sizes = [8, 32], strides = [1, 1]} : vector<8x128xf32> to vector<8x32xf32>
    %45 = vector.extract_strided_slice %42 {offsets = [0, 64], sizes = [8, 32], strides = [1, 1]} : vector<8x128xf32> to vector<8x32xf32>
    %cst_15 = arith.constant 2.000000e+00 : f32
    %46 = vector.broadcast %cst_15 : f32 to vector<8x32xf32>
    %47 = arith.mulf %46, %45 : vector<8x32xf32>
    %cst_16 = arith.constant 1.000000e+00 : f32
    %48 = vector.broadcast %cst_16 : f32 to vector<8x32xf32>
    %49 = arith.subf %47, %48 : vector<8x32xf32>
    %50 = vector.extract_strided_slice %42 {offsets = [0, 96], sizes = [8, 32], strides = [1, 1]} : vector<8x128xf32> to vector<8x32xf32>
    %51 = arith.mulf %44, %32 : vector<8x32xf32>
    %52 = arith.mulf %43, %49 : vector<8x32xf32>
    %53 = arith.addf %51, %52 : vector<8x32xf32>
    %54 = math.tanh %53 : vector<8x32xf32>
    %55 = arith.mulf %50, %54 : vector<8x32xf32>
    %56 = vector.extract_strided_slice %11 {offsets = [16, 0], sizes = [8, 128], strides = [1, 1]} : vector<56x128xf32> to vector<8x128xf32>
    %cst_17 = arith.constant dense<0.000000e+00> : vector<8x128xf32>
    %57 = tpu.matmul %55, %4, %cst_17 {dimension_numbers = #tpu.dot_dimension_numbers<[1], [0], [0], [1], [0, 0, 1, 1], [], []>} : vector<8x32xf32>, vector<32x128xf32>, vector<8x128xf32> -> vector<8x128xf32>
    %58 = arith.addf %56, %57 : vector<8x128xf32>
    %59 = arith.negf %58 : vector<8x128xf32>
    %60 = math.exp %59 : vector<8x128xf32>
    %cst_18 = arith.constant 1.000000e+00 : f32
    %61 = vector.broadcast %cst_18 : f32 to vector<8x128xf32>
    %62 = arith.addf %61, %60 : vector<8x128xf32>
    %63 = arith.divf %61, %62 : vector<8x128xf32>
    %64 = vector.extract_strided_slice %63 {offsets = [0, 0], sizes = [8, 32], strides = [1, 1]} : vector<8x128xf32> to vector<8x32xf32>
    %65 = vector.extract_strided_slice %63 {offsets = [0, 32], sizes = [8, 32], strides = [1, 1]} : vector<8x128xf32> to vector<8x32xf32>
    %66 = vector.extract_strided_slice %63 {offsets = [0, 64], sizes = [8, 32], strides = [1, 1]} : vector<8x128xf32> to vector<8x32xf32>
    %cst_19 = arith.constant 2.000000e+00 : f32
    %67 = vector.broadcast %cst_19 : f32 to vector<8x32xf32>
    %68 = arith.mulf %67, %66 : vector<8x32xf32>
    %cst_20 = arith.constant 1.000000e+00 : f32
    %69 = vector.broadcast %cst_20 : f32 to vector<8x32xf32>
    %70 = arith.subf %68, %69 : vector<8x32xf32>
    %71 = vector.extract_strided_slice %63 {offsets = [0, 96], sizes = [8, 32], strides = [1, 1]} : vector<8x128xf32> to vector<8x32xf32>
    %72 = arith.mulf %65, %53 : vector<8x32xf32>
    %73 = arith.mulf %64, %70 : vector<8x32xf32>
    %74 = arith.addf %72, %73 : vector<8x32xf32>
    %75 = math.tanh %74 : vector<8x32xf32>
    %76 = arith.mulf %71, %75 : vector<8x32xf32>
    %77 = vector.extract_strided_slice %11 {offsets = [24, 0], sizes = [8, 128], strides = [1, 1]} : vector<56x128xf32> to vector<8x128xf32>
    %cst_21 = arith.constant dense<0.000000e+00> : vector<8x128xf32>
    %78 = tpu.matmul %76, %4, %cst_21 {dimension_numbers = #tpu.dot_dimension_numbers<[1], [0], [0], [1], [0, 0, 1, 1], [], []>} : vector<8x32xf32>, vector<32x128xf32>, vector<8x128xf32> -> vector<8x128xf32>
    %79 = arith.addf %77, %78 : vector<8x128xf32>
    %80 = arith.negf %79 : vector<8x128xf32>
    %81 = math.exp %80 : vector<8x128xf32>
    %cst_22 = arith.constant 1.000000e+00 : f32
    %82 = vector.broadcast %cst_22 : f32 to vector<8x128xf32>
    %83 = arith.addf %82, %81 : vector<8x128xf32>
    %84 = arith.divf %82, %83 : vector<8x128xf32>
    %85 = vector.extract_strided_slice %84 {offsets = [0, 0], sizes = [8, 32], strides = [1, 1]} : vector<8x128xf32> to vector<8x32xf32>
    %86 = vector.extract_strided_slice %84 {offsets = [0, 32], sizes = [8, 32], strides = [1, 1]} : vector<8x128xf32> to vector<8x32xf32>
    %87 = vector.extract_strided_slice %84 {offsets = [0, 64], sizes = [8, 32], strides = [1, 1]} : vector<8x128xf32> to vector<8x32xf32>
    %cst_23 = arith.constant 2.000000e+00 : f32
    %88 = vector.broadcast %cst_23 : f32 to vector<8x32xf32>
    %89 = arith.mulf %88, %87 : vector<8x32xf32>
    %cst_24 = arith.constant 1.000000e+00 : f32
    %90 = vector.broadcast %cst_24 : f32 to vector<8x32xf32>
    %91 = arith.subf %89, %90 : vector<8x32xf32>
    %92 = vector.extract_strided_slice %84 {offsets = [0, 96], sizes = [8, 32], strides = [1, 1]} : vector<8x128xf32> to vector<8x32xf32>
    %93 = arith.mulf %86, %74 : vector<8x32xf32>
    %94 = arith.mulf %85, %91 : vector<8x32xf32>
    %95 = arith.addf %93, %94 : vector<8x32xf32>
    %96 = math.tanh %95 : vector<8x32xf32>
    %97 = arith.mulf %92, %96 : vector<8x32xf32>
    %98 = vector.extract_strided_slice %11 {offsets = [32, 0], sizes = [8, 128], strides = [1, 1]} : vector<56x128xf32> to vector<8x128xf32>
    %cst_25 = arith.constant dense<0.000000e+00> : vector<8x128xf32>
    %99 = tpu.matmul %97, %4, %cst_25 {dimension_numbers = #tpu.dot_dimension_numbers<[1], [0], [0], [1], [0, 0, 1, 1], [], []>} : vector<8x32xf32>, vector<32x128xf32>, vector<8x128xf32> -> vector<8x128xf32>
    %100 = arith.addf %98, %99 : vector<8x128xf32>
    %101 = arith.negf %100 : vector<8x128xf32>
    %102 = math.exp %101 : vector<8x128xf32>
    %cst_26 = arith.constant 1.000000e+00 : f32
    %103 = vector.broadcast %cst_26 : f32 to vector<8x128xf32>
    %104 = arith.addf %103, %102 : vector<8x128xf32>
    %105 = arith.divf %103, %104 : vector<8x128xf32>
    %106 = vector.extract_strided_slice %105 {offsets = [0, 0], sizes = [8, 32], strides = [1, 1]} : vector<8x128xf32> to vector<8x32xf32>
    %107 = vector.extract_strided_slice %105 {offsets = [0, 32], sizes = [8, 32], strides = [1, 1]} : vector<8x128xf32> to vector<8x32xf32>
    %108 = vector.extract_strided_slice %105 {offsets = [0, 64], sizes = [8, 32], strides = [1, 1]} : vector<8x128xf32> to vector<8x32xf32>
    %cst_27 = arith.constant 2.000000e+00 : f32
    %109 = vector.broadcast %cst_27 : f32 to vector<8x32xf32>
    %110 = arith.mulf %109, %108 : vector<8x32xf32>
    %cst_28 = arith.constant 1.000000e+00 : f32
    %111 = vector.broadcast %cst_28 : f32 to vector<8x32xf32>
    %112 = arith.subf %110, %111 : vector<8x32xf32>
    %113 = vector.extract_strided_slice %105 {offsets = [0, 96], sizes = [8, 32], strides = [1, 1]} : vector<8x128xf32> to vector<8x32xf32>
    %114 = arith.mulf %107, %95 : vector<8x32xf32>
    %115 = arith.mulf %106, %112 : vector<8x32xf32>
    %116 = arith.addf %114, %115 : vector<8x32xf32>
    %117 = math.tanh %116 : vector<8x32xf32>
    %118 = arith.mulf %113, %117 : vector<8x32xf32>
    %119 = vector.extract_strided_slice %11 {offsets = [40, 0], sizes = [8, 128], strides = [1, 1]} : vector<56x128xf32> to vector<8x128xf32>
    %cst_29 = arith.constant dense<0.000000e+00> : vector<8x128xf32>
    %120 = tpu.matmul %118, %4, %cst_29 {dimension_numbers = #tpu.dot_dimension_numbers<[1], [0], [0], [1], [0, 0, 1, 1], [], []>} : vector<8x32xf32>, vector<32x128xf32>, vector<8x128xf32> -> vector<8x128xf32>
    %121 = arith.addf %119, %120 : vector<8x128xf32>
    %122 = arith.negf %121 : vector<8x128xf32>
    %123 = math.exp %122 : vector<8x128xf32>
    %cst_30 = arith.constant 1.000000e+00 : f32
    %124 = vector.broadcast %cst_30 : f32 to vector<8x128xf32>
    %125 = arith.addf %124, %123 : vector<8x128xf32>
    %126 = arith.divf %124, %125 : vector<8x128xf32>
    %127 = vector.extract_strided_slice %126 {offsets = [0, 0], sizes = [8, 32], strides = [1, 1]} : vector<8x128xf32> to vector<8x32xf32>
    %128 = vector.extract_strided_slice %126 {offsets = [0, 32], sizes = [8, 32], strides = [1, 1]} : vector<8x128xf32> to vector<8x32xf32>
    %129 = vector.extract_strided_slice %126 {offsets = [0, 64], sizes = [8, 32], strides = [1, 1]} : vector<8x128xf32> to vector<8x32xf32>
    %cst_31 = arith.constant 2.000000e+00 : f32
    %130 = vector.broadcast %cst_31 : f32 to vector<8x32xf32>
    %131 = arith.mulf %130, %129 : vector<8x32xf32>
    %cst_32 = arith.constant 1.000000e+00 : f32
    %132 = vector.broadcast %cst_32 : f32 to vector<8x32xf32>
    %133 = arith.subf %131, %132 : vector<8x32xf32>
    %134 = vector.extract_strided_slice %126 {offsets = [0, 96], sizes = [8, 32], strides = [1, 1]} : vector<8x128xf32> to vector<8x32xf32>
    %135 = arith.mulf %128, %116 : vector<8x32xf32>
    %136 = arith.mulf %127, %133 : vector<8x32xf32>
    %137 = arith.addf %135, %136 : vector<8x32xf32>
    %138 = math.tanh %137 : vector<8x32xf32>
    %139 = arith.mulf %134, %138 : vector<8x32xf32>
    %140 = vector.extract_strided_slice %11 {offsets = [48, 0], sizes = [8, 128], strides = [1, 1]} : vector<56x128xf32> to vector<8x128xf32>
    %cst_33 = arith.constant dense<0.000000e+00> : vector<8x128xf32>
    %141 = tpu.matmul %139, %4, %cst_33 {dimension_numbers = #tpu.dot_dimension_numbers<[1], [0], [0], [1], [0, 0, 1, 1], [], []>} : vector<8x32xf32>, vector<32x128xf32>, vector<8x128xf32> -> vector<8x128xf32>
    %142 = arith.addf %140, %141 : vector<8x128xf32>
    %143 = arith.negf %142 : vector<8x128xf32>
    %144 = math.exp %143 : vector<8x128xf32>
    %cst_34 = arith.constant 1.000000e+00 : f32
    %145 = vector.broadcast %cst_34 : f32 to vector<8x128xf32>
    %146 = arith.addf %145, %144 : vector<8x128xf32>
    %147 = arith.divf %145, %146 : vector<8x128xf32>
    %148 = vector.extract_strided_slice %147 {offsets = [0, 0], sizes = [8, 32], strides = [1, 1]} : vector<8x128xf32> to vector<8x32xf32>
    %149 = vector.extract_strided_slice %147 {offsets = [0, 32], sizes = [8, 32], strides = [1, 1]} : vector<8x128xf32> to vector<8x32xf32>
    %150 = vector.extract_strided_slice %147 {offsets = [0, 64], sizes = [8, 32], strides = [1, 1]} : vector<8x128xf32> to vector<8x32xf32>
    %cst_35 = arith.constant 2.000000e+00 : f32
    %151 = vector.broadcast %cst_35 : f32 to vector<8x32xf32>
    %152 = arith.mulf %151, %150 : vector<8x32xf32>
    %cst_36 = arith.constant 1.000000e+00 : f32
    %153 = vector.broadcast %cst_36 : f32 to vector<8x32xf32>
    %154 = arith.subf %152, %153 : vector<8x32xf32>
    %155 = vector.extract_strided_slice %147 {offsets = [0, 96], sizes = [8, 32], strides = [1, 1]} : vector<8x128xf32> to vector<8x32xf32>
    %156 = arith.mulf %149, %137 : vector<8x32xf32>
    %157 = arith.mulf %148, %154 : vector<8x32xf32>
    %158 = arith.addf %156, %157 : vector<8x32xf32>
    %159 = math.tanh %158 : vector<8x32xf32>
    %160 = arith.mulf %155, %159 : vector<8x32xf32>
    %c56 = arith.constant 56 : index
    %c0_37 = arith.constant 0 : index
    %161 = vector.load %arg1[%c56, %c0_37] : memref<96x128xf32, #tpu.memory_space<vmem>>, vector<32x128xf32>
    %c88 = arith.constant 88 : index
    %c0_38 = arith.constant 0 : index
    %162 = vector.load %arg1[%c88, %c0_38] : memref<96x128xf32, #tpu.memory_space<vmem>>, vector<1x128xf32>
    %cst_39 = arith.constant dense<0.000000e+00> : vector<8x128xf32>
    %163 = tpu.matmul %160, %161, %cst_39 {dimension_numbers = #tpu.dot_dimension_numbers<[1], [0], [0], [1], [0, 0, 1, 1], [], []>} : vector<8x32xf32>, vector<32x128xf32>, vector<8x128xf32> -> vector<8x128xf32>
    %164 = vector.broadcast %162 : vector<1x128xf32> to vector<8x128xf32>
    %165 = arith.addf %163, %164 : vector<8x128xf32>
    %c0_40 = arith.constant 0 : index
    %c0_41 = arith.constant 0 : index
    %166 = vector.load %arg2[%c0_40, %c0_41] : memref<8x128xf32, #tpu.memory_space<vmem>>, vector<8x128xf32>
    tpu.vector_store %arg2[%c0_40, %c0_41], %165 {strides = array<i32>} : memref<8x128xf32, #tpu.memory_space<vmem>>, vector<8x128xf32>,
    return
  }
}

</mosaic_0001>

<bundles_post_ra>
// kernel: tpu_custom_call.1
= control target key start
LH: loop header
LB: loop body
LE: loop exit
PB: predicated region body
PF: predicated region fallthrough
CT: control target
= control target key end

     0   :  { %7 = vsyncpa [#allocation3], 0  ;;  %s1647_s0 = inlined_call_operand.vmem [shape: f32[64,8], index: 0, kind: input, shape index: {}]   ;;  %s1648_s1 = inlined_call_operand.hbm [shape: f32[96,128], index: 1, kind: input, shape index: {}]   ;;  %s1649_s2 = inlined_call_operand.hbm [shape: f32[8,128], index: 2, kind: output, shape index: {}]  }
   0x1   :  { %8 = vsyncpa [#allocation4], 0  ;;  %s1458_s9 = smov [#allocation2]   ;;  %s1410_s13 = scalar_lea.hbm %s1648_s1, 1536 }
   0x2   :  { %s16_s10 = sshll.u32 %s1458_s9, 4  ;;  %p1411_p0 = scmp.ne.s32.totalorder %s1648_s1, %s1410_s13  ;;  %s17_s10 = int_to_ptr.vmem [resolvable:$true] %s16_s10 }
   0x3   :  { %p1414_p1 = scmp.lt.u32.totalorder %s1410_s13, %s1648_s1 }
   0x5   :  { %p1416_p2 = pnand %p1414_p1, %p1411_p0 }
   0x7   :  { %1419 = shalt.err (!%p1416_p2)
}
   0x8   :  { %s1420_s18 = scalar_lea.vmem %s17_s10, 1536  ;;  %p1425_p4 = scmp.lt.s32.totalorder %s17_s10, %s17_s10 }
   0x9   :  { %p1421_p3 = scmp.ne.s32.totalorder %s17_s10, %s1420_s18  ;;  %p1426_p5 = scmp.lt.s32.totalorder %s1420_s18, %s1420_s18 }
   0xb   :  { %p1427_p6 = por %p1426_p5, %p1425_p4 }
   0xd   :  { %p1428_p7 = pnand %p1427_p6, %p1421_p3 }
   0xf   :  { %1431 = shalt.err (!%p1428_p7)
}
  0x10   :  { %s1459_s19 = smov 128   ;;  %s1460_s20 = smov 8  }
  0x11   :  { %22 = dma.hbm_to_vmem [thread:$0]  %s1648_s1, 1536, %s17_s10, [#allocation3], %s1459_s19, %s1459_s19, %s1460_s20  }
  0x12   :  { %1454 = dma.done.wait [#allocation3], 1536  }
  0x13   :  { %1455 = vsyncadd [#allocation3], 4294965760  ;;  %vm41_vm0 = vcmask 64512   ;;  %v34_v0 = vld [vmem:[#allocation2] sm:$0xff]  ;;  %v35_v1 = vld [vmem:[#allocation2 + $0x8] sm:$0xff]  ;;  %v1461_v10 = vmov 0.0|0.0  }
  0x14   :  { %v26_v2 = vld [vmem:[%s1647_s0] sm:$0xff]  ;;  %1195 = vmatprep.subr.mxu0 %v34_v0  ;;  %1209 = vmatprep.subr.mxu1 %v35_v1  ;;  %v27_v3 = vld [vmem:[%s1647_s0 + $0x8] sm:$0xff]  ;;  %v37_v4 = vld [vmem:[#allocation2 + $0x18] sm:$0xff]  ;;  %vm1462_vm1 = vmmov 0   ;;  %v1463_v17 = vmov 0.0   ;;  %s1465_s10 = smov 32  }
  0x15   :  { %v38_v5 = vld [vmem:[#allocation2 + $0x20] sm:$0xff]  ;;  %1196 = vmatpush3.msra.mxu0 %v34_v0  ;;  %1197 = vmatprep.mubr.msk.f32.mxu0 %vm41_vm0, %v26_v2  ;;  %v28_v7 = vld [vmem:[%s1647_s0 + $0x10] sm:$0xff]  ;;  %v39_v8 = vld [vmem:[#allocation2 + $0x28] sm:$0xff]  ;;  %vm292_vm2 = vcmask 261120   ;;  %s1466_s11 = smov [#allocation5]  }
  0x16   :  { %v1501_v6 = vpack.c.bf16 %v38_v5, %v37_v4  ;;  %1210 = vmatpush3.msra.mxu1 %v35_v1  ;;  %1211 = vmatprep.mubr.msk.f32.mxu1 %vm41_vm0, %v26_v2  ;;  %v40_v9 = vld [vmem:[#allocation2 + $0x30] sm:$0xff]  ;;  %v29_v11 = vld [vmem:[%s1647_s0 + $0x18] sm:$0xff]  ;;  %v30_v12 = vld [vmem:[%s1647_s0 + $0x20] sm:$0xff]  ;;  %s1089_s12 = sshll.u32 %s1466_s11, 4  ;;  %s1090_s12 = int_to_ptr.vmem [resolvable:$true] %s1089_s12 }
  0x17   :  { %1198 = vmatmul.mubr.msk.f32.vlgmr.msra.gmra.mrb[0].mxu0 %vm41_vm0, %v27_v3  ;;  %1212 = vmatmul.mubr.msk.f32.vlgmr.msra.gmra.mrb[0].mxu1 %vm41_vm0, %v27_v3  ;;  %v1519_v13 = vpack.c.bf16 %v40_v9, %v39_v8  ;;  %v31_v14 = vld [vmem:[%s1647_s0 + $0x28] sm:$0xff]  ;;  %v32_v15 = vld [vmem:[%s1647_s0 + $0x30] sm:$0xff]  ;;  %v33_v16 = vld [vmem:[%s1647_s0 + $0x38] sm:$0xff]  ;;  %s1464_s0 = smov 64   ;;  %s1432_s13 = scalar_lea.vmem %s1090_s12, 128 }
  0x18   :  { %1311 = vmatprep.subr.bf16.mxu0 %v1461_v10  ;;  %1200 = vmatprep.mubr.msk.f32.mxu0 %vm41_vm0, %v28_v7  ;;  %v1114_v29 = vld [vmem:[#allocation2 + $0x10] ss:$0 sm:$0xff]  ;;  %p1433_p8 = scmp.ne.s32.totalorder %s1090_s12, %s1432_s13  ;;  %p1437_p9 = scmp.lt.s32.totalorder %s1090_s12, %s1090_s12 }
  0x19   :  { %1313 = vmatpush3.bf16.msra.mxu0 %v1501_v6  ;;  %1214 = vmatprep.mubr.msk.f32.mxu1 %vm41_vm0, %v28_v7  ;;  %p1438_p10 = scmp.lt.s32.totalorder %s1432_s13, %s1432_s13 }
  0x1a   :  { %1314 = vmatprep.subr.bf16.mxu0 %v1461_v10  ;;  %1317 = vmatprep.subr.bf16.mxu1 %v1461_v10 }
  0x1b   :  { %1201 = vmatmul.mubr.msk.f32.gmra.mrb[2].mxu0 %vm41_vm0, %v29_v11  ;;  %1215 = vmatmul.mubr.msk.f32.gmra.mrb[2].mxu1 %vm41_vm0, %v29_v11  ;;  %p1439_p11 = por %p1438_p10, %p1437_p9 }
  0x1c   :  { %1203 = vmatprep.mubr.msk.f32.mxu0 %vm41_vm0, %v30_v12  ;;  %1217 = vmatprep.mubr.msk.f32.mxu1 %vm41_vm0, %v30_v12 }
  0x1d   :  { %1316 = vmatpush3.bf16.msra.mxu0 %v1519_v13  ;;  %1319 = vmatpush3.bf16.msra.mxu1 %v1501_v6  ;;  %p1440_p12 = pnand %p1439_p11, %p1433_p8 }
  0x1e   :  { %1320 = vmatprep.subr.bf16.mxu1 %v1461_v10  ;;  %1323 = vmatprep.subr.bf16.mxu0 %v1461_v10 }
  0x1f   :  { %1204 = vmatmul.mubr.msk.f32.gmra.mrb[4].mxu0 %vm41_vm0, %v31_v14  ;;  %1218 = vmatmul.mubr.msk.f32.gmra.mrb[4].mxu1 %vm41_vm0, %v31_v14 }
  0x20   :  { %1206 = vmatprep.mubr.msk.f32.mxu0 %vm41_vm0, %v32_v15  ;;  %1220 = vmatprep.mubr.msk.f32.mxu1 %vm41_vm0, %v32_v15 }
  0x21   :  { %1322 = vmatpush3.bf16.msra.mxu1 %v1519_v13 }
  0x22   :  { %1329 = vmatprep.subr.bf16.mxu1 %v1461_v10 }
  0x23   :  { %1207 = vmatmul.mubr.msk.f32.gmra.mrb[6].mxu0 %vm41_vm0, %v33_v16  ;;  %1221 = vmatmul.mubr.msk.f32.gmra.mrb[6].mxu1 %vm41_vm0, %v33_v16 }
  0x24   :  { %1231 = vmatprep.mubr.msk.f32.mxu0 %vm1462_vm1, %v1463_v17  ;;  %1242 = vmatprep.mubr.msk.f32.mxu1 %vm1462_vm1, %v1463_v17 }
  0x27   :  { %1232 = vmatmul.mubr.f32.vlgmr.msra.gmra.mrb[8].mxu0 %v1463_v17 }
  0x28   :  { %1325 = vmatpush3.bf16.msra.mxu0 %v1501_v6  ;;  %1253 = vmatprep.mubr.msk.f32.mxu0 %vm1462_vm1, %v1463_v17 }
  0x29   :  { %1326 = vmatprep.subr.bf16.mxu0 %v1461_v10 }
  0x2c   :  { %1328 = vmatpush3.bf16.msra.mxu0 %v1519_v13 }
  0x2d   :  { %1335 = vmatprep.subr.bf16.mxu0 %v1461_v10 }
  0xea   :  { %v1199_v18 = vpop.f32.mrb[0].mxu0  ;;  %v1213_v19 = vpop.f32.mrb[0].mxu1 }
  0xeb   :  { %v132_v20 = vpop.f32.mrb[1].mxu0  ;;  %v236_v21 = vpop.f32.mrb[1].mxu1 }
  0xec   :  { %v274_v22 = vadd.f32 %v1213_v19, %v132_v20 }
  0xee   :  { %v1202_v23 = vpop.f32.mrb[2].mxu0  ;;  %v1216_v24 = vpop.f32.mrb[2].mxu1  ;;  %v285_v46 = vadd.f32 %v1114_v29, %v274_v22 }
  0xef   :  { %v142_v25 = vpop.f32.mrb[3].mxu0  ;;  %v245_v26 = vpop.f32.mrb[3].mxu1 }
  0xf0   :  { %v276_v27 = vadd.f32 %v1216_v24, %v142_v25  ;;  %v275_v28 = vadd.f32 %v1199_v18, %v245_v26 }
  0xf2   :  { %v1205_v30 = vpop.f32.mrb[4].mxu0  ;;  %v1219_v31 = vpop.f32.mrb[4].mxu1  ;;  %v286_v32 = vadd.f32 %v1114_v29, %v275_v28  ;;  %v1559_v33 = vadd.f32 %v1114_v29, %v276_v27 }
  0xf3   :  { %v152_v34 = vpop.f32.mrb[5].mxu0  ;;  %v255_v35 = vpop.f32.mrb[5].mxu1 }
  0xf4   :  { %v278_v36 = vadd.f32 %v1219_v31, %v152_v34  ;;  %v277_v37 = vadd.f32 %v1202_v23, %v255_v35 }
  0xf6   :  { %v1208_v38 = vpop.f32.mrb[6].mxu0  ;;  %v1222_v39 = vpop.f32.mrb[6].mxu1  ;;  %v1561_v40 = vadd.f32 %v1114_v29, %v277_v37  ;;  %v1563_v41 = vadd.f32 %v1114_v29, %v278_v36 }
  0xf7   :  { %v162_v42 = vpop.f32.mrb[7].mxu0  ;;  %v265_v43 = vpop.f32.mrb[7].mxu1 }
  0xf8   :  { %v280_v44 = vadd.f32 %v1222_v39, %v162_v42  ;;  %v279_v45 = vadd.f32 %v1205_v30, %v265_v43 }
  0xfa   :  { %v362_v47 = vpop.f32.mrb[8].mxu0  ;;  %v1565_v48 = vadd.f32 %v1114_v29, %v279_v45  ;;  %v1567_v49 = vadd.f32 %v1114_v29, %v280_v44 }
  0xfb   :  { %v366_v50 = vadd.f32 %v362_v47, %v285_v46  ;;  %v1233_v51 = vpop.f32.mrb[9].mxu0 }
  0xfd   :  { %v1115_v52 = vmul.f32 -1.442695, %v366_v50 }
  0xff   :  { %1368 = vpow2.f32 %v1115_v52 }
 0x109   :  { %v1369_v53 = vpop.eup %1368 }
 0x10a   :  { %v370_v54 = vadd.f32 1.0, %v1369_v53 }
 0x10c   :  { %1370 = vrcp.f32 %v370_v54 }
 0x116   :  { %v1371_v55 = vpop.eup %1370 }
 0x117   :  { %v373_v56 = vmul.f32 2.0, %v1371_v55  ;;  %v375_v60 = vmul.f32 0.0, %v1371_v55 }
 0x119   :  { %v1116_v57 = vadd.f32 -1.0, %v373_v56 }
 0x11b   :  { %377 = vrot.lane.b32.xlu0 %v1116_v57, %s1464_s0 }
 0x18d   :  { %v378_v58 = vpop.permute.xlu0 %377 }
 0x18e   :  { %v380_v59 = vmul.f32 %v1371_v55, %v378_v58 }
 0x190   :  { %382 = vrot.lane.b32.xlu0 %v380_v59, %s1465_s10 }
 0x202   :  { %v383_v61 = vpop.permute.xlu0 %382 }
 0x203   :  { %v385_v62 = vadd.f32 %v383_v61, %v375_v60 }
 0x205   :  { %1372 = vtanh.f32 %v385_v62 }
 0x20f   :  { %v1373_v63 = vpop.eup %1372 }
 0x210   :  { %388 = vrot.lane.b32.xlu1 %v1373_v63, %s1464_s0 }
 0x282   :  { %v389_v0 = vpop.permute.xlu1 %388 }
 0x283   :  { %v391_v1 = vmul.f32 %v1371_v55, %v389_v0 }
 0x285   :  { %393 = vrot.lane.b32.xlu1 %v391_v1, %s1465_s10 }
 0x2f7   :  { %v394_v2 = vpop.permute.xlu1 %393 }
 0x2f8   :  { %1243 = vmatmul.mubr.msk.f32.vlgmr.msra.gmra.mrb[8].mxu1 %vm292_vm2, %v394_v2 }
 0x2f9   :  { %1331 = vmatpush3.bf16.msra.mxu1 %v1501_v6  ;;  %1264 = vmatprep.mubr.msk.f32.mxu1 %vm1462_vm1, %v1463_v17 }
 0x2fa   :  { %1332 = vmatprep.subr.bf16.mxu1 %v1461_v10 }
 0x2fd   :  { %1334 = vmatpush3.bf16.msra.mxu1 %v1519_v13 }
 0x2fe   :  { %1341 = vmatprep.subr.bf16.mxu1 %v1461_v10 }
 0x3cb   :  { %v463_v3 = vpop.f32.mrb[8].mxu1 }
 0x3cc   :  { %v467_v4 = vadd.f32 %v463_v3, %v286_v32  ;;  %v1244_v5 = vpop.f32.mrb[9].mxu1 }
 0x3ce   :  { %v1118_v7 = vmul.f32 -1.442695, %v467_v4 }
 0x3d0   :  { %1374 = vpow2.f32 %v1118_v7 }
 0x3da   :  { %v1375_v8 = vpop.eup %1374 }
 0x3db   :  { %v471_v9 = vadd.f32 1.0, %v1375_v8 }
 0x3dd   :  { %1376 = vrcp.f32 %v471_v9 }
 0x3e7   :  { %v1377_v11 = vpop.eup %1376 }
 0x3e8   :  { %v474_v12 = vmul.f32 2.0, %v1377_v11  ;;  %v476_v18 = vmul.f32 %v1377_v11, %v385_v62 }
 0x3ea   :  { %v1119_v14 = vadd.f32 -1.0, %v474_v12 }
 0x3ec   :  { %478 = vrot.lane.b32.xlu0 %v1119_v14, %s1464_s0 }
 0x45e   :  { %v479_v15 = vpop.permute.xlu0 %478 }
 0x45f   :  { %v481_v16 = vmul.f32 %v1377_v11, %v479_v15 }
 0x461   :  { %483 = vrot.lane.b32.xlu1 %v481_v16, %s1465_s10 }
 0x4d3   :  { %v484_v19 = vpop.permute.xlu1 %483 }
 0x4d4   :  { %v486_v20 = vadd.f32 %v484_v19, %v476_v18 }
 0x4d6   :  { %1378 = vtanh.f32 %v486_v20 }
 0x4e0   :  { %v1379_v21 = vpop.eup %1378 }
 0x4e1   :  { %489 = vrot.lane.b32.xlu0 %v1379_v21, %s1464_s0 }
 0x553   :  { %v490_v22 = vpop.permute.xlu0 %489 }
 0x554   :  { %v492_v23 = vmul.f32 %v1377_v11, %v490_v22 }
 0x556   :  { %494 = vrot.lane.b32.xlu1 %v492_v23, %s1465_s10 }
 0x5c8   :  { %v495_v24 = vpop.permute.xlu1 %494 }
 0x5c9   :  { %1254 = vmatmul.mubr.msk.f32.vlgmr.msra.gmra.mrb[10].mxu0 %vm292_vm2, %v495_v24 }
 0x5ca   :  { %1337 = vmatpush3.bf16.msra.mxu0 %v1501_v6  ;;  %1275 = vmatprep.mubr.msk.f32.mxu0 %vm1462_vm1, %v1463_v17 }
 0x5cb   :  { %1338 = vmatprep.subr.bf16.mxu0 %v1461_v10 }
 0x5ce   :  { %1340 = vmatpush3.bf16.msra.mxu0 %v1519_v13 }
 0x5cf   :  { %1347 = vmatprep.subr.bf16.mxu0 %v1461_v10 }
 0x69c   :  { %v564_v25 = vpop.f32.mrb[10].mxu0 }
 0x69d   :  { %v568_v26 = vadd.f32 %v564_v25, %v1559_v33  ;;  %v1255_v27 = vpop.f32.mrb[11].mxu0 }
 0x69f   :  { %v1121_v28 = vmul.f32 -1.442695, %v568_v26 }
 0x6a1   :  { %1380 = vpow2.f32 %v1121_v28 }
 0x6ab   :  { %v1381_v29 = vpop.eup %1380 }
 0x6ac   :  { %v572_v30 = vadd.f32 1.0, %v1381_v29 }
 0x6ae   :  { %1382 = vrcp.f32 %v572_v30 }
 0x6b8   :  { %v1383_v31 = vpop.eup %1382 }
 0x6b9   :  { %v575_v32 = vmul.f32 2.0, %v1383_v31  ;;  %v577_v37 = vmul.f32 %v1383_v31, %v486_v20 }
 0x6bb   :  { %v1122_v34 = vadd.f32 -1.0, %v575_v32 }
 0x6bd   :  { %579 = vrot.lane.b32.xlu0 %v1122_v34, %s1464_s0 }
 0x72f   :  { %v580_v35 = vpop.permute.xlu0 %579 }
 0x730   :  { %v582_v36 = vmul.f32 %v1383_v31, %v580_v35 }
 0x732   :  { %584 = vrot.lane.b32.xlu1 %v582_v36, %s1465_s10 }
 0x7a4   :  { %v585_v38 = vpop.permute.xlu1 %584 }
 0x7a5   :  { %v587_v39 = vadd.f32 %v585_v38, %v577_v37 }
 0x7a7   :  { %1384 = vtanh.f32 %v587_v39 }
 0x7b1   :  { %v1385_v33 = vpop.eup %1384 }
 0x7b2   :  { %590 = vrot.lane.b32.xlu0 %v1385_v33, %s1464_s0 }
 0x824   :  { %v591_v42 = vpop.permute.xlu0 %590 }
 0x825   :  { %v593_v43 = vmul.f32 %v1383_v31, %v591_v42 }
 0x827   :  { %595 = vrot.lane.b32.xlu1 %v593_v43, %s1465_s10 }
 0x899   :  { %v596_v44 = vpop.permute.xlu1 %595 }
 0x89a   :  { %1265 = vmatmul.mubr.msk.f32.vlgmr.msra.gmra.mrb[10].mxu1 %vm292_vm2, %v596_v44 }
 0x89b   :  { %1343 = vmatpush3.bf16.msra.mxu1 %v1501_v6  ;;  %1286 = vmatprep.mubr.msk.f32.mxu1 %vm1462_vm1, %v1463_v17 }
 0x89c   :  { %1344 = vmatprep.subr.bf16.mxu1 %v1461_v10 }
 0x89f   :  { %1346 = vmatpush3.bf16.msra.mxu1 %v1519_v13 }
 0x8a0   :  { %1353 = vmatprep.subr.bf16.mxu1 %v1461_v10 }
 0x96d   :  { %v665_v45 = vpop.f32.mrb[10].mxu1 }
 0x96e   :  { %v669_v46 = vadd.f32 %v665_v45, %v1561_v40  ;;  %v1266_v47 = vpop.f32.mrb[11].mxu1 }
 0x970   :  { %v1124_v50 = vmul.f32 -1.442695, %v669_v46 }
 0x972   :  { %1386 = vpow2.f32 %v1124_v50 }
 0x97c   :  { %v1387_v51 = vpop.eup %1386 }
 0x97d   :  { %v673_v52 = vadd.f32 1.0, %v1387_v51 }
 0x97f   :  { %1388 = vrcp.f32 %v673_v52 }
 0x989   :  { %v1389_v53 = vpop.eup %1388 }
 0x98a   :  { %v676_v54 = vmul.f32 2.0, %v1389_v53  ;;  %v678_v58 = vmul.f32 %v1389_v53, %v587_v39 }
 0x98c   :  { %v1125_v55 = vadd.f32 -1.0, %v676_v54  ;;  %v1000_v54 = vld [vmem:[#allocation2 + $0x48] sm:$0xff] }
 0x98e   :  { %680 = vrot.lane.b32.xlu0 %v1125_v55, %s1464_s0 }
 0xa00   :  { %v681_v56 = vpop.permute.xlu0 %680 }
 0xa01   :  { %v683_v57 = vmul.f32 %v1389_v53, %v681_v56  ;;  %v1001_v56 = vld [vmem:[#allocation2 + $0x50] sm:$0xff] }
 0xa03   :  { %685 = vrot.lane.b32.xlu1 %v683_v57, %s1465_s10  ;;  %v1357_v57 = vpack.c.bf16 %v1001_v56, %v1000_v54 }
 0xa75   :  { %v686_v59 = vpop.permute.xlu1 %685 }
 0xa76   :  { %v688_v60 = vadd.f32 %v686_v59, %v678_v58 }
 0xa78   :  { %1390 = vtanh.f32 %v688_v60 }
 0xa82   :  { %v1391_v40 = vpop.eup %1390 }
 0xa83   :  { %691 = vrot.lane.b32.xlu0 %v1391_v40, %s1464_s0 }
 0xaf5   :  { %v692_v61 = vpop.permute.xlu0 %691 }
 0xaf6   :  { %v694_v62 = vmul.f32 %v1389_v53, %v692_v61  ;;  %v999_v53 = vld [vmem:[#allocation2 + $0x40] sm:$0xff]  ;;  %v1135_v61 = vld [vmem:[#allocation2 + $0x58] ss:$0 sm:$0xff] }
 0xaf8   :  { %696 = vrot.lane.b32.xlu1 %v694_v62, %s1465_s10 }
 0xb6a   :  { %v697_v63 = vpop.permute.xlu1 %696 }
 0xb6b   :  { %1276 = vmatmul.mubr.msk.f32.vlgmr.msra.gmra.mrb[12].mxu0 %vm292_vm2, %v697_v63 }
 0xb6c   :  { %1349 = vmatpush3.bf16.msra.mxu0 %v1501_v6  ;;  %1297 = vmatprep.mubr.msk.f32.mxu0 %vm1462_vm1, %v1463_v17 }
 0xb6d   :  { %1350 = vmatprep.subr.bf16.mxu0 %v1461_v10 }
 0xb70   :  { %1352 = vmatpush3.bf16.msra.mxu0 %v1519_v13 }
 0xc3e   :  { %v766_v0 = vpop.f32.mrb[12].mxu0 }
 0xc3f   :  { %v770_v1 = vadd.f32 %v766_v0, %v1563_v41  ;;  %v1277_v2 = vpop.f32.mrb[13].mxu0 }
 0xc41   :  { %v1127_v3 = vmul.f32 -1.442695, %v770_v1 }
 0xc43   :  { %1392 = vpow2.f32 %v1127_v3 }
 0xc4d   :  { %v1393_v4 = vpop.eup %1392 }
 0xc4e   :  { %v774_v5 = vadd.f32 1.0, %v1393_v4 }
 0xc50   :  { %1394 = vrcp.f32 %v774_v5 }
 0xc5a   :  { %v1395_v7 = vpop.eup %1394 }
 0xc5b   :  { %v777_v8 = vmul.f32 2.0, %v1395_v7  ;;  %v779_v12 = vmul.f32 %v1395_v7, %v688_v60 }
 0xc5d   :  { %v1128_v9 = vadd.f32 -1.0, %v777_v8 }
 0xc5f   :  { %781 = vrot.lane.b32.xlu0 %v1128_v9, %s1464_s0 }
 0xcd1   :  { %v782_v6 = vpop.permute.xlu0 %781 }
 0xcd2   :  { %v784_v11 = vmul.f32 %v1395_v7, %v782_v6 }
 0xcd4   :  { %786 = vrot.lane.b32.xlu1 %v784_v11, %s1465_s10 }
 0xd46   :  { %v787_v13 = vpop.permute.xlu1 %786 }
 0xd47   :  { %v789_v14 = vadd.f32 %v787_v13, %v779_v12 }
 0xd49   :  { %1396 = vtanh.f32 %v789_v14 }
 0xd53   :  { %v1397_v41 = vpop.eup %1396 }
 0xd54   :  { %792 = vrot.lane.b32.xlu0 %v1397_v41, %s1464_s0 }
 0xdc6   :  { %v793_v15 = vpop.permute.xlu0 %792 }
 0xdc7   :  { %v795_v16 = vmul.f32 %v1395_v7, %v793_v15 }
 0xdc9   :  { %797 = vrot.lane.b32.xlu1 %v795_v16, %s1465_s10 }
 0xe3b   :  { %v798_v18 = vpop.permute.xlu1 %797 }
 0xe3c   :  { %1287 = vmatmul.mubr.msk.f32.vlgmr.msra.gmra.mrb[12].mxu1 %vm292_vm2, %v798_v18 }
 0xe3d   :  { %1308 = vmatprep.mubr.msk.f32.mxu1 %vm1462_vm1, %v1463_v17 }
 0xf0f   :  { %v867_v19 = vpop.f32.mrb[12].mxu1 }
 0xf10   :  { %v871_v20 = vadd.f32 %v867_v19, %v1565_v48  ;;  %v1288_v21 = vpop.f32.mrb[13].mxu1 }
 0xf12   :  { %v1130_v22 = vmul.f32 -1.442695, %v871_v20 }
 0xf14   :  { %1398 = vpow2.f32 %v1130_v22 }
 0xf1e   :  { %v1399_v23 = vpop.eup %1398 }
 0xf1f   :  { %v875_v24 = vadd.f32 1.0, %v1399_v23 }
 0xf21   :  { %1400 = vrcp.f32 %v875_v24 }
 0xf2b   :  { %v1401_v25 = vpop.eup %1400 }
 0xf2c   :  { %v878_v26 = vmul.f32 2.0, %v1401_v25  ;;  %v880_v30 = vmul.f32 %v1401_v25, %v789_v14 }
 0xf2e   :  { %v1131_v27 = vadd.f32 -1.0, %v878_v26 }
 0xf30   :  { %882 = vrot.lane.b32.xlu0 %v1131_v27, %s1464_s0 }
 0xfa2   :  { %v883_v28 = vpop.permute.xlu0 %882 }
 0xfa3   :  { %v885_v29 = vmul.f32 %v1401_v25, %v883_v28 }
 0xfa5   :  { %887 = vrot.lane.b32.xlu1 %v885_v29, %s1465_s10 }
0x1017   :  { %v888_v17 = vpop.permute.xlu1 %887 }
0x1018   :  { %v890_v31 = vadd.f32 %v888_v17, %v880_v30 }
0x101a   :  { %1402 = vtanh.f32 %v890_v31 }
0x1024   :  { %v1403_v48 = vpop.eup %1402 }
0x1025   :  { %893 = vrot.lane.b32.xlu0 %v1403_v48, %s1464_s0 }
0x1097   :  { %v894_v32 = vpop.permute.xlu0 %893 }
0x1098   :  { %v896_v34 = vmul.f32 %v1401_v25, %v894_v32 }
0x109a   :  { %898 = vrot.lane.b32.xlu1 %v896_v34, %s1465_s10 }
0x110c   :  { %v899_v35 = vpop.permute.xlu1 %898 }
0x110d   :  { %1298 = vmatmul.mubr.msk.f32.vlgmr.msra.gmra.mrb[14].mxu0 %vm292_vm2, %v899_v35 }
0x11e0   :  { %v968_v36 = vpop.f32.mrb[14].mxu0 }
0x11e1   :  { %v972_v37 = vadd.f32 %v968_v36, %v1567_v49  ;;  %v1299_v38 = vpop.f32.mrb[15].mxu0  ;;  %v998_v49 = vld [vmem:[#allocation2 + $0x38] sm:$0xff] }
0x11e2   :  { %v1354_v55 = vpack.c.bf16 %v999_v53, %v998_v49 }
0x11e3   :  { %v1133_v39 = vmul.f32 -1.442695, %v972_v37 }
0x11e4   :  { %1355 = vmatpush3.bf16.msra.mxu1 %v1354_v55 }
0x11e5   :  { %1404 = vpow2.f32 %v1133_v39  ;;  %1356 = vmatprep.subr.bf16.mxu1 %v1461_v10 }
0x11e8   :  { %1358 = vmatpush3.bf16.msra.mxu1 %v1357_v57 }
0x11ef   :  { %v1405_v33 = vpop.eup %1404 }
0x11f0   :  { %v976_v42 = vadd.f32 1.0, %v1405_v33 }
0x11f2   :  { %1406 = vrcp.f32 %v976_v42 }
0x11fc   :  { %v1407_v43 = vpop.eup %1406 }
0x11fd   :  { %v979_v44 = vmul.f32 2.0, %v1407_v43  ;;  %v981_v50 = vmul.f32 %v1407_v43, %v890_v31 }
0x11ff   :  { %v1134_v45 = vadd.f32 -1.0, %v979_v44 }
0x1201   :  { %983 = vrot.lane.b32.xlu0 %v1134_v45, %s1464_s0 }
0x1273   :  { %v984_v46 = vpop.permute.xlu0 %983 }
0x1274   :  { %v986_v47 = vmul.f32 %v1407_v43, %v984_v46 }
0x1276   :  { %988 = vrot.lane.b32.xlu1 %v986_v47, %s1465_s10 }
0x12e8   :  { %v989_v51 = vpop.permute.xlu1 %988 }
0x12e9   :  { %v991_v52 = vadd.f32 %v989_v51, %v981_v50 }
0x12eb   :  { %1408 = vtanh.f32 %v991_v52 }
0x12f5   :  { %v1409_v58 = vpop.eup %1408 }
0x12f6   :  { %994 = vrot.lane.b32.xlu0 %v1409_v58, %s1464_s0 }
0x1368   :  { %v995_v59 = vpop.permute.xlu0 %994 }
0x1369   :  { %v997_v60 = vmul.f32 %v1407_v43, %v995_v59 }
0x136b   :  { %1008 = vrot.lane.b32.xlu1 %v997_v60, %s1465_s10 }
0x13dd   :  { %v1009_v40 = vpop.permute.xlu1 %1008 }
0x13de   :  { %1309 = vmatmul.mubr.msk.f32.vlgmr.msra.gmra.mrb[14].mxu1 %vm292_vm2, %v1009_v40 }
0x14b1   :  { %v1078_v62 = vpop.f32.mrb[14].mxu1 }
0x14b2   :  { %v1079_v63 = vadd.f32 %v1135_v61, %v1078_v62  ;;  %v1310_v0 = vpop.f32.mrb[15].mxu1 }
0x14b4   :  { %1082 = vst [vmem:[#allocation5] sm:$0xff] %v1079_v63 }
0x14b5   :  { %1443 = shalt.err (!%p1440_p12)
}
0x14b6   :  { %s1444_s16 = scalar_lea.hbm %s1649_s2, 128 }
0x14b7   :  { %p1445_p13 = scmp.ne.s32.totalorder %s1649_s2, %s1444_s16  ;;  %p1448_p0 = scmp.lt.u32.totalorder %s1444_s16, %s1649_s2 }
0x14b9   :  { %p1450_p1 = pnand %p1448_p0, %p1445_p13 }
0x14bb   :  { %1453 = shalt.err (!%p1450_p1)
}
0x14bc   :  { %1092 = dma.vmem_to_hbm [thread:$0]  %s1090_s12, 128, %s1649_s2, [#allocation4]  }
0x14bd   :  { %1456 = dma.done.wait [#allocation4], 128  }
0x14be   :  { %1457 = vsyncadd [#allocation4], 4294967168 }
0x14bf   :  { %1096 = vsyncpa [#allocation3], 1 }
0x14c0   :  { %1097 = vsyncpa [#allocation4], 1 }

</bundles_post_ra>
